<compile_context>
chip_gen: v5e
topology: v5e:2x2
jax: 0.10.0
libtpu: 0.0.40
codegen_flags: <defaults>
</compile_context>

<pallas_src>
import math

import jax
import jax.numpy as jnp
from jax.experimental import pallas as pl
from jax.experimental.pallas import tpu as pltpu


# ----------------------------------------------------------------------------
# Tile selection: largest divisor of `total` that is <= cap and a multiple of
# `quantum` (falls back to the full extent, which is always a legal block dim).
# ----------------------------------------------------------------------------
def _pick_tile(total, cap, quantum):
    if total <= cap:
        return total
    for t in range(cap, 0, -1):
        if total % t == 0 and t % quantum == 0:
            return t
    return total


# ----------------------------------------------------------------------------
# Pallas kernel: DMBERT dynamic-multi-pooling head (tiled over batch x seq).
# ----------------------------------------------------------------------------
def _dmbert_head_kernel(h_ref, mL_ref, mR_ref, wL_ref, wR_ref, b_ref, out_ref,
                        accL_ref, accR_ref):
    s = pl.program_id(1)

    @pl.when(s == 0)
    def _init():
        accL_ref[...] = jnp.full_like(accL_ref, -jnp.inf)
        accR_ref[...] = jnp.full_like(accR_ref, -jnp.inf)

    h = h_ref[...].astype(jnp.float32)            # [TB, TS, H]  (bf16 -> f32)
    mL = mL_ref[...]                              # [TB, TS, 1]  broadcast on lanes
    mR = mR_ref[...]
    L = h * mL + 1.0
    R = h * mR + 1.0
    accL_ref[...] = jnp.maximum(accL_ref[...], jnp.max(L, axis=1))   # [TB, H]
    accR_ref[...] = jnp.maximum(accR_ref[...], jnp.max(R, axis=1))

    @pl.when(s == pl.num_programs(1) - 1)
    def _finalize():
        pooledL = accL_ref[...] - 1.0             # [TB, H]
        pooledR = accR_ref[...] - 1.0
        out_ref[...] = (
            jnp.dot(pooledL, wL_ref[...], preferred_element_type=jnp.float32)
            + jnp.dot(pooledR, wR_ref[...], preferred_element_type=jnp.float32)
            + b_ref[...]
        )


def dmbert_head(hidden, maskL, maskR, W, b, *, seq_tile=512, batch_tile=8):
    """hidden: [B,S,H], maskL/maskR: [B,S], W: [2H,num_labels], b: [num_labels]."""
    B, S, H = hidden.shape
    num_labels = W.shape[1]
    NL = ((num_labels + 127) // 128) * 128        # lane-dense padded logits width

    TB = _pick_tile(B, batch_tile, 8)
    TS = _pick_tile(S, seq_tile, 8)

    h_bf16 = hidden.astype(jnp.bfloat16)          # halve HBM bytes of dominant input
    mL = maskL[:, :, None].astype(jnp.float32)    # [B, S, 1] compact mask
    mR = maskR[:, :, None].astype(jnp.float32)
    pad = NL - num_labels
    wL = jnp.pad(W[:H].astype(jnp.float32), ((0, 0), (0, pad)))
    wR = jnp.pad(W[H:].astype(jnp.float32), ((0, 0), (0, pad)))
    b2 = jnp.pad(b.astype(jnp.float32), (0, pad)).reshape(1, NL)

    cost = pl.CostEstimate(
        flops=6 * B * S * H + 4 * B * H * NL,
        transcendentals=0,
        bytes_accessed=(B * S * H * 2          # bf16 hidden
                        + 2 * B * S * 4        # compact masks
                        + 2 * H * NL * 4       # classifier weights
                        + B * NL * 4),         # logits
    )

    out = pl.pallas_call(
        _dmbert_head_kernel,
        out_shape=jax.ShapeDtypeStruct((B, NL), jnp.float32),
        grid_spec=pltpu.PrefetchScalarGridSpec(
            num_scalar_prefetch=0,
            grid=(B // TB, S // TS),
            in_specs=[
                pl.BlockSpec((TB, TS, H), lambda bi, si: (bi, si, 0)),
                pl.BlockSpec((TB, TS, 1), lambda bi, si: (bi, si, 0)),
                pl.BlockSpec((TB, TS, 1), lambda bi, si: (bi, si, 0)),
                pl.BlockSpec((H, NL), lambda bi, si: (0, 0)),
                pl.BlockSpec((H, NL), lambda bi, si: (0, 0)),
                pl.BlockSpec((1, NL), lambda bi, si: (0, 0)),
            ],
            out_specs=pl.BlockSpec((TB, NL), lambda bi, si: (bi, 0)),
            scratch_shapes=[
                pltpu.VMEM((TB, H), jnp.float32),   # running max (L side)
                pltpu.VMEM((TB, H), jnp.float32),   # running max (R side)
            ],
        ),
        compiler_params=pltpu.CompilerParams(
            dimension_semantics=("parallel", "arbitrary"),
            vmem_limit_bytes=48 * 1024 * 1024,      # > scoped defaults, < v7x physical
        ),
        cost_estimate=cost,
    )(h_bf16, mL, mR, wL, wR, b2)

    return out[:, :num_labels]


# ----------------------------------------------------------------------------
# Deterministic BERT-style encoder stand-in (plain JAX glue).
# ----------------------------------------------------------------------------
def _layer_norm(x, eps=1e-12):
    mu = jnp.mean(x, axis=-1, keepdims=True)
    var = jnp.mean((x - mu) ** 2, axis=-1, keepdims=True)
    return (x - mu) / jnp.sqrt(var + eps)


def bert_like_encoder(params, input_ids, attention_mask, token_type_ids):
    B, S = input_ids.shape
    x = (params["tok_emb"][input_ids]
         + params["pos_emb"][jnp.arange(S)][None, :, :]
         + params["type_emb"][token_type_ids])
    x = _layer_norm(x)

    H = x.shape[-1]
    q = x @ params["Wq"]
    k = x @ params["Wk"]
    v = x @ params["Wv"]
    scores = jnp.einsum("bqh,bkh->bqk", q, k) / math.sqrt(H)
    bias = (1.0 - attention_mask[:, None, :].astype(jnp.float32)) * -1e9
    attn = jax.nn.softmax(scores + bias, axis=-1)
    ctx = jnp.einsum("bqk,bkh->bqh", attn, v)
    x = _layer_norm(x + ctx @ params["Wo"])
    ff = jax.nn.gelu(x @ params["W1"]) @ params["W2"]
    x = _layer_norm(x + ff)
    return x  # last_hidden_state [B, S, H]


# ----------------------------------------------------------------------------
# Full DMBERT forward (inference path: label_ids=None -> returns logits).
# ----------------------------------------------------------------------------
def dmbert_forward(params, input_ids, attention_mask, token_type_ids,
                   candidate_mask, maskL, maskR, truncated):
    hidden = bert_like_encoder(params, input_ids, attention_mask, token_type_ids)
    logits = dmbert_head(hidden, maskL, maskR, params["cls_W"], params["cls_b"])
    # masked_select(logits, truncated == 0).view(-1, num_labels):
    # dynamic-shape boolean selection, done on concrete arrays outside the kernel.
    keep = (truncated == 0)
    logits = logits[keep].reshape(-1, logits.shape[-1])
    return logits


def _head_reference(hidden, maskL, maskR, W, b):
    """Pure-JAX reference mirroring the PyTorch ops, for correctness check."""
    conv = jnp.transpose(hidden, (2, 0, 1))                       # [H, B, S]
    L = jnp.transpose(conv * maskL[None, :, :], (1, 0, 2)) + 1.0  # [B, H, S]
    R = jnp.transpose(conv * maskR[None, :, :], (1, 0, 2)) + 1.0
    pooledL = jnp.max(L, axis=-1)                                 # [B, H]
    pooledR = jnp.max(R, axis=-1)
    pooled = jnp.concatenate([pooledL, pooledR], axis=1) - 1.0    # [B, 2H]
    return jnp.dot(pooled, W, precision=jax.lax.Precision.HIGHEST) + b


if __name__ == "__main__":
    # Small, module-consistent shapes.
    B, S, H = 2, 16, 32
    VOCAB, NUM_LABELS = 64, 8

    key = jax.random.PRNGKey(0)
    ks = jax.random.split(key, 12)
    init = lambda k, shape: (0.02 * jax.random.normal(k, shape)).astype(jnp.float32)

    params = {
        "tok_emb": init(ks[0], (VOCAB, H)),
        "pos_emb": init(ks[1], (S, H)),
        "type_emb": init(ks[2], (2, H)),
        "Wq": init(ks[3], (H, H)),
        "Wk": init(ks[4], (H, H)),
        "Wv": init(ks[5], (H, H)),
        "Wo": init(ks[6], (H, H)),
        "W1": init(ks[7], (H, 4 * H)),
        "W2": init(ks[8], (4 * H, H)),
        "cls_W": init(ks[9], (2 * H, NUM_LABELS)),   # nn.Linear(hidden*2, num_labels)
        "cls_b": init(ks[10], (NUM_LABELS,)),
    }

    input_ids = jax.random.randint(ks[11], (B, S), 0, VOCAB)
    attention_mask = jnp.ones((B, S), dtype=jnp.int32)
    token_type_ids = jnp.zeros((B, S), dtype=jnp.int32)
    candidate_mask = jnp.ones((B,), dtype=bool)
    # maskL / maskR: left/right trigger masks over the sequence (float 0/1).
    trig = S // 2
    pos = jnp.arange(S)
    maskL = jnp.broadcast_to((pos <= trig).astype(jnp.float32), (B, S))
    maskR = jnp.broadcast_to((pos >= trig).astype(jnp.float32), (B, S))
    truncated = jnp.zeros((B,), dtype=jnp.int32)

    logits = dmbert_forward(params, input_ids, attention_mask, token_type_ids,
                            candidate_mask, maskL, maskR, truncated)
    jax.block_until_ready(logits)

    # Cross-check Pallas head against the pure-JAX (PyTorch-shaped) reference.
    # The kernel consumes bf16 hidden; feed the same rounded values to the ref.
    hidden = bert_like_encoder(params, input_ids, attention_mask, token_type_ids)
    hidden_q = hidden.astype(jnp.bfloat16).astype(jnp.float32)
    ref = _head_reference(hidden_q, maskL, maskR, params["cls_W"], params["cls_b"])
    ref = ref[(truncated == 0)].reshape(-1, NUM_LABELS)
    assert logits.shape == (B, NUM_LABELS)
    assert jnp.allclose(logits, ref, atol=1e-3, rtol=1e-3)

    print("KERNEL_OK")
</pallas_src>

<mosaic_0001>
module attributes {stable_mosaic.version = 11 : i64} {
  func.func @_dmbert_head_kernel(%arg0: i32, %arg1: i32, %arg2: memref<2x16x32xbf16, #tpu.memory_space<vmem>>, %arg3: memref<2x16x1xf32, #tpu.memory_space<vmem>>, %arg4: memref<2x16x1xf32, #tpu.memory_space<vmem>>, %arg5: memref<32x128xf32, #tpu.memory_space<vmem>>, %arg6: memref<32x128xf32, #tpu.memory_space<vmem>>, %arg7: memref<1x128xf32, #tpu.memory_space<vmem>>, %arg8: memref<2x128xf32, #tpu.memory_space<vmem>>, %arg9: memref<2x32xf32, #tpu.memory_space<vmem>>, %arg10: memref<2x32xf32, #tpu.memory_space<vmem>>) attributes {dimension_semantics = [#tpu.dimension_semantics<parallel>, #tpu.dimension_semantics<arbitrary>], iteration_bounds = array<i64: 1, 1>, scalar_prefetch = 0 : i64, scratch_operands = 2 : i64, tpu.core_type = #tpu.core_type<tc>, window_params = [{transform_indices = @transform_0, window_bounds = array<i64: 2, 16, 32>}, {transform_indices = @transform_1, window_bounds = array<i64: 2, 16, 1>}, {transform_indices = @transform_2, window_bounds = array<i64: 2, 16, 1>}, {pipeline_mode = #tpu.pipeline_mode<synchronous>, transform_indices = @transform_3, window_bounds = array<i64: 32, 128>}, {pipeline_mode = #tpu.pipeline_mode<synchronous>, transform_indices = @transform_4, window_bounds = array<i64: 32, 128>}, {pipeline_mode = #tpu.pipeline_mode<synchronous>, transform_indices = @transform_5, window_bounds = array<i64: 1, 128>}, {transform_indices = @transform_6, window_bounds = array<i64: 2, 128>}]} {
    %c0_i32 = arith.constant 0 : i32
    %0 = arith.cmpi eq, %arg1, %c0_i32 : i32
    %1 = arith.extui %0 : i1 to i32
    %c0_i32_0 = arith.constant 0 : i32
    %2 = arith.cmpi ne, %1, %c0_i32_0 : i32
    scf.if %2 {
      %cst_22 = arith.constant 0xFF800000 : f32
      %26 = vector.broadcast %cst_22 : f32 to vector<2x32xf32>
      %c0_23 = arith.constant 0 : index
      %c0_24 = arith.constant 0 : index
      %27 = vector.load %arg9[%c0_23, %c0_24] : memref<2x32xf32, #tpu.memory_space<vmem>>, vector<2x32xf32>
      tpu.vector_store %arg9[%c0_23, %c0_24], %26 {strides = array<i32>} : memref<2x32xf32, #tpu.memory_space<vmem>>, vector<2x32xf32>,
      %cst_25 = arith.constant 0xFF800000 : f32
      %28 = vector.broadcast %cst_25 : f32 to vector<2x32xf32>
      %c0_26 = arith.constant 0 : index
      %c0_27 = arith.constant 0 : index
      %29 = vector.load %arg10[%c0_26, %c0_27] : memref<2x32xf32, #tpu.memory_space<vmem>>, vector<2x32xf32>
      tpu.vector_store %arg10[%c0_26, %c0_27], %28 {strides = array<i32>} : memref<2x32xf32, #tpu.memory_space<vmem>>, vector<2x32xf32>,
    } else {
    }
    %c0 = arith.constant 0 : index
    %c0_1 = arith.constant 0 : index
    %c0_2 = arith.constant 0 : index
    %3 = vector.load %arg2[%c0, %c0_1, %c0_2] : memref<2x16x32xbf16, #tpu.memory_space<vmem>>, vector<2x16x32xbf16>
    %4 = arith.extf %3 : vector<2x16x32xbf16> to vector<2x16x32xf32>
    %c0_3 = arith.constant 0 : index
    %c0_4 = arith.constant 0 : index
    %c0_5 = arith.constant 0 : index
    %5 = vector.load %arg3[%c0_3, %c0_4, %c0_5] : memref<2x16x1xf32, #tpu.memory_space<vmem>>, vector<2x16x1xf32>
    %c0_6 = arith.constant 0 : index
    %c0_7 = arith.constant 0 : index
    %c0_8 = arith.constant 0 : index
    %6 = vector.load %arg4[%c0_6, %c0_7, %c0_8] : memref<2x16x1xf32, #tpu.memory_space<vmem>>, vector<2x16x1xf32>
    %7 = vector.broadcast %5 : vector<2x16x1xf32> to vector<2x16x32xf32>
    %8 = arith.mulf %4, %7 : vector<2x16x32xf32>
    %cst = arith.constant 1.000000e+00 : f32
    %9 = vector.broadcast %cst : f32 to vector<2x16x32xf32>
    %10 = arith.addf %8, %9 : vector<2x16x32xf32>
    %11 = vector.broadcast %6 : vector<2x16x1xf32> to vector<2x16x32xf32>
    %12 = arith.mulf %4, %11 : vector<2x16x32xf32>
    %cst_9 = arith.constant 1.000000e+00 : f32
    %13 = vector.broadcast %cst_9 : f32 to vector<2x16x32xf32>
    %14 = arith.addf %12, %13 : vector<2x16x32xf32>
    %c0_10 = arith.constant 0 : index
    %c0_11 = arith.constant 0 : index
    %15 = vector.load %arg9[%c0_10, %c0_11] : memref<2x32xf32, #tpu.memory_space<vmem>>, vector<2x32xf32>
    %cst_12 = arith.constant dense<0xFF800000> : vector<2x32xf32>
    %16 = vector.multi_reduction <maximumf>, %10, %cst_12 [1] : vector<2x16x32xf32> to vector<2x32xf32>
    %17 = arith.maximumf %15, %16 : vector<2x32xf32>
    %c0_13 = arith.constant 0 : index
    %c0_14 = arith.constant 0 : index
    %18 = vector.load %arg9[%c0_13, %c0_14] : memref<2x32xf32, #tpu.memory_space<vmem>>, vector<2x32xf32>
    tpu.vector_store %arg9[%c0_13, %c0_14], %17 {strides = array<i32>} : memref<2x32xf32, #tpu.memory_space<vmem>>, vector<2x32xf32>,
    %c0_15 = arith.constant 0 : index
    %c0_16 = arith.constant 0 : index
    %19 = vector.load %arg10[%c0_15, %c0_16] : memref<2x32xf32, #tpu.memory_space<vmem>>, vector<2x32xf32>
    %cst_17 = arith.constant dense<0xFF800000> : vector<2x32xf32>
    %20 = vector.multi_reduction <maximumf>, %14, %cst_17 [1] : vector<2x16x32xf32> to vector<2x32xf32>
    %21 = arith.maximumf %19, %20 : vector<2x32xf32>
    %c0_18 = arith.constant 0 : index
    %c0_19 = arith.constant 0 : index
    %22 = vector.load %arg10[%c0_18, %c0_19] : memref<2x32xf32, #tpu.memory_space<vmem>>, vector<2x32xf32>
    tpu.vector_store %arg10[%c0_18, %c0_19], %21 {strides = array<i32>} : memref<2x32xf32, #tpu.memory_space<vmem>>, vector<2x32xf32>,
    %c0_i32_20 = arith.constant 0 : i32
    %23 = arith.cmpi eq, %arg1, %c0_i32_20 : i32
    %24 = arith.extui %23 : i1 to i32
    %c0_i32_21 = arith.constant 0 : i32
    %25 = arith.cmpi ne, %24, %c0_i32_21 : i32
    scf.if %25 {
      %c0_22 = arith.constant 0 : index
      %c0_23 = arith.constant 0 : index
      %26 = vector.load %arg9[%c0_22, %c0_23] : memref<2x32xf32, #tpu.memory_space<vmem>>, vector<2x32xf32>
      %cst_24 = arith.constant 1.000000e+00 : f32
      %27 = vector.broadcast %cst_24 : f32 to vector<2x32xf32>
      %28 = arith.subf %26, %27 : vector<2x32xf32>
      %c0_25 = arith.constant 0 : index
      %c0_26 = arith.constant 0 : index
      %29 = vector.load %arg10[%c0_25, %c0_26] : memref<2x32xf32, #tpu.memory_space<vmem>>, vector<2x32xf32>
      %cst_27 = arith.constant 1.000000e+00 : f32
      %30 = vector.broadcast %cst_27 : f32 to vector<2x32xf32>
      %31 = arith.subf %29, %30 : vector<2x32xf32>
      %c0_28 = arith.constant 0 : index
      %c0_29 = arith.constant 0 : index
      %32 = vector.load %arg5[%c0_28, %c0_29] : memref<32x128xf32, #tpu.memory_space<vmem>>, vector<32x128xf32>
      %cst_30 = arith.constant dense<0.000000e+00> : vector<2x128xf32>
      %33 = tpu.matmul %28, %32, %cst_30 {dimension_numbers = #tpu.dot_dimension_numbers<[1], [0], [0], [1], [0, 0, 1, 1], [], []>} : vector<2x32xf32>, vector<32x128xf32>, vector<2x128xf32> -> vector<2x128xf32>
      %c0_31 = arith.constant 0 : index
      %c0_32 = arith.constant 0 : index
      %34 = vector.load %arg6[%c0_31, %c0_32] : memref<32x128xf32, #tpu.memory_space<vmem>>, vector<32x128xf32>
      %cst_33 = arith.constant dense<0.000000e+00> : vector<2x128xf32>
      %35 = tpu.matmul %31, %34, %cst_33 {dimension_numbers = #tpu.dot_dimension_numbers<[1], [0], [0], [1], [0, 0, 1, 1], [], []>} : vector<2x32xf32>, vector<32x128xf32>, vector<2x128xf32> -> vector<2x128xf32>
      %36 = arith.addf %33, %35 : vector<2x128xf32>
      %c0_34 = arith.constant 0 : index
      %c0_35 = arith.constant 0 : index
      %37 = vector.load %arg7[%c0_34, %c0_35] : memref<1x128xf32, #tpu.memory_space<vmem>>, vector<1x128xf32>
      %38 = vector.broadcast %37 : vector<1x128xf32> to vector<2x128xf32>
      %39 = arith.addf %36, %38 : vector<2x128xf32>
      %c0_36 = arith.constant 0 : index
      %c0_37 = arith.constant 0 : index
      %40 = vector.load %arg8[%c0_36, %c0_37] : memref<2x128xf32, #tpu.memory_space<vmem>>, vector<2x128xf32>
      tpu.vector_store %arg8[%c0_36, %c0_37], %39 {strides = array<i32>} : memref<2x128xf32, #tpu.memory_space<vmem>>, vector<2x128xf32>,
    } else {
    }
    return
  }
  func.func @transform_0(%arg0: i32, %arg1: i32) -> (i32, i32, i32) {
    %c0_i32 = arith.constant 0 : i32
    %c0_i32_0 = arith.constant 0 : i32
    return %arg0, %arg1, %c0_i32 : i32, i32, i32
  }
  func.func @transform_1(%arg0: i32, %arg1: i32) -> (i32, i32, i32) {
    %c0_i32 = arith.constant 0 : i32
    %c0_i32_0 = arith.constant 0 : i32
    return %arg0, %arg1, %c0_i32 : i32, i32, i32
  }
  func.func @transform_2(%arg0: i32, %arg1: i32) -> (i32, i32, i32) {
    %c0_i32 = arith.constant 0 : i32
    %c0_i32_0 = arith.constant 0 : i32
    return %arg0, %arg1, %c0_i32 : i32, i32, i32
  }
  func.func @transform_3(%arg0: i32, %arg1: i32) -> (i32, i32) {
    %c0_i32 = arith.constant 0 : i32
    %c0_i32_0 = arith.constant 0 : i32
    %c0_i32_1 = arith.constant 0 : i32
    return %c0_i32, %c0_i32_0 : i32, i32
  }
  func.func @transform_4(%arg0: i32, %arg1: i32) -> (i32, i32) {
    %c0_i32 = arith.constant 0 : i32
    %c0_i32_0 = arith.constant 0 : i32
    %c0_i32_1 = arith.constant 0 : i32
    return %c0_i32, %c0_i32_0 : i32, i32
  }
  func.func @transform_5(%arg0: i32, %arg1: i32) -> (i32, i32) {
    %c0_i32 = arith.constant 0 : i32
    %c0_i32_0 = arith.constant 0 : i32
    %c0_i32_1 = arith.constant 0 : i32
    return %c0_i32, %c0_i32_0 : i32, i32
  }
  func.func @transform_6(%arg0: i32, %arg1: i32) -> (i32, i32) {
    %c0_i32 = arith.constant 0 : i32
    %c0_i32_0 = arith.constant 0 : i32
    return %arg0, %c0_i32 : i32, i32
  }
}

</mosaic_0001>

<bundles_post_ra>
// kernel: tpu_custom_call.1
= control target key start
LH: loop header
LB: loop body
LE: loop exit
PB: predicated region body
PF: predicated region fallthrough
CT: control target
= control target key end

     0   :  { %11 = vsyncpa [#allocation5], 0  ;;  %s445_s0 = inlined_call_operand.hbm [shape: bf16[2,16,32], index: 0, kind: input, shape index: {}]   ;;  %s446_s1 = inlined_call_operand.vmem [shape: f32[2,16,1], index: 1, kind: input, shape index: {}]   ;;  %s447_s2 = inlined_call_operand.vmem [shape: f32[2,16,1], index: 2, kind: input, shape index: {}]   ;;  %s448_s3 = inlined_call_operand.vmem [shape: f32[32,128], index: 3, kind: input, shape index: {}]   ;;  %s449_s4 = inlined_call_operand.vmem [shape: f32[32,128], index: 4, kind: input, shape index: {}]   ;;  %s450_s5 = inlined_call_operand.vmem [shape: f32[1,128], index: 5, kind: input, shape index: {}]   ;;  %s451_s6 = inlined_call_operand.hbm [shape: f32[2,128], index: 6, kind: output, shape index: {}]  }
   0x1   :  { %12 = vsyncpa [#allocation6], 0  ;;  %s17_s23 = sshll.u32 %s445_s0, 4  ;;  %s331_s24 = smov [#allocation4]   ;;  %s18_s23 = int_to_ptr.hbm [resolvable:$true] %s17_s23 }
   0x2   :  { %s19_s25 = sshll.u32 %s331_s24, 4  ;;  %s332_s26 = smov 64   ;;  %s20_s25 = int_to_ptr.vmem [resolvable:$true] %s19_s25 }
   0x3   :  { %s333_s27 = smov 4  }
   0x4   :  { %25 = dma.hbm_to_vmem [thread:$0]  %s18_s23, 256, %s20_s25, [#allocation5], %s332_s26, %s332_s26, %s333_s27  }
   0x5   :  { %327 = dma.done.wait [#allocation5], 256  }
   0x6   :  { %328 = vsyncadd [#allocation5], 4294967040  ;;  %v334_v0 = vmov 0   ;;  %v57_v1 = vld [vmem:[%s446_s1 + $0x10] sm:$0xff]  ;;  %v55_v2 = vld [vmem:[%s446_s1] sm:$0xff]  ;;  %vm44_vm0 = vcmask 254976  }
   0x7   :  { %276 = vset.pattern.permute.xlu1 %v334_v0  ;;  %275 = vset.pattern.permute.xlu0 %v334_v0  ;;  %v59_v3 = vld [vmem:[%s447_s2] sm:$0xff]  ;;  %v58_v4 = vld [vmem:[%s446_s1 + $0x18] sm:$0xff]  ;;  %v56_v5 = vld [vmem:[%s446_s1 + $0x8] sm:$0xff]  ;;  %v335_v10 = vmov -inf   ;;  %vm120_vm1 = vcmask 261120   ;;  %vm141_vm2 = vcmask 1041409  }
   0x8   :  { %277 = vset.pattern.permute.xlu2 %v334_v0  ;;  %75 = vperm.xlu1 %276, %v57_v1   ;;  %v60_v6 = vld [vmem:[%s447_s2 + $0x8] sm:$0xff]  ;;  %v62_v7 = vld [vmem:[%s447_s2 + $0x18] sm:$0xff]  ;;  %v61_v8 = vld [vmem:[%s447_s2 + $0x10] sm:$0xff]  ;;  %45 = vst.msk [vmem:[#allocation2] sm:$0x3] %vm44_vm0, %v335_v10  ;;  %s336_s8 = smov [#allocation7]  }
   0x9   :  { %65 = vperm.xlu0 %275, %v55_v2   ;;  %93 = vperm.xlu2 %277, %v59_v3   ;;  %46 = vst.msk [vmem:[#allocation3] sm:$0x3] %vm44_vm0, %v335_v10  ;;  %v261_v11 = vld [vmem:[#allocation4] sm:$0xff]   ;;  %v268_v15 = vld [vmem:[#allocation4 + $0x8] sm:$0xff]   ;;  %v182_v21 = vld [vmem:[%s448_s3 + $0x18] sm:$0xff]  ;;  %s244_s9 = sshll.u32 %s336_s8, 4  ;;  %s245_s9 = int_to_ptr.vmem [resolvable:$true] %s244_s9 }
   0xa   :  { %v263_v12 = vunpack.c.h.bf16 %v261_v11  ;;  %v262_v14 = vunpack.c.l.bf16 %v261_v11  ;;  %v266_v20 = vunpack.c.l.bf16 %v268_v15  ;;  %225 = vmatpush.msra.mxu1 %v182_v21  ;;  %v181_v24 = vld [vmem:[%s448_s3 + $0x10] sm:$0xff]  ;;  %v267_v27 = vunpack.c.h.bf16 %v268_v15  ;;  %v180_v28 = vld [vmem:[%s448_s3 + $0x8] sm:$0xff]  ;;  %v179_v31 = vld [vmem:[%s448_s3] sm:$0xff]  ;;  %s246_s12 = sshll.u32 %s451_s6, 4  ;;  %s247_s12 = int_to_ptr.hbm [resolvable:$true] %s246_s12 }
   0xb   :  { %v186_v38 = vld [vmem:[%s449_s4 + $0x18] sm:$0xff]  ;;  %v185_v39 = vld [vmem:[%s449_s4 + $0x10] sm:$0xff]  ;;  %v184_v43 = vld [vmem:[%s449_s4 + $0x8] sm:$0xff] }
   0xc   :  { %226 = vmatpush.msra.mxu1 %v181_v24  ;;  %202 = vmatpush.msra.mxu0 %v186_v38  ;;  %v183_v48 = vld [vmem:[%s449_s4] sm:$0xff] }
   0xe   :  { %227 = vmatpush.msra.mxu1 %v180_v28  ;;  %203 = vmatpush.msra.mxu0 %v185_v39 }
  0x10   :  { %80 = vperm.xlu1 %276, %v58_v4   ;;  %228 = vmatpush.msra.mxu1 %v179_v31 }
  0x11   :  { %70 = vperm.xlu0 %275, %v56_v5   ;;  %98 = vperm.xlu2 %277, %v60_v6  }
  0x12   :  { %204 = vmatpush.msra.mxu0 %v184_v43 }
  0x14   :  { %205 = vmatpush.msra.mxu0 %v183_v48 }
  0x18   :  { %108 = vperm.xlu1 %276, %v62_v7  }
  0x19   :  { %103 = vperm.xlu0 %275, %v61_v8  }
  0x63   :  { %v94_v9 = vpop.permute.xlu2 %93 }
  0x64   :  { %v111_v16 = vmul.f32 %v262_v14, %v94_v9 }
  0x66   :  { %v115_v22 = vadd.f32 1.0, %v111_v16 }
  0x68   :  { %v148_v29 = vsel %vm120_vm1, %v115_v22, -inf  ;;  %v147_v22 = vld [vmem:[#allocation3] sm:$0x3] }
  0x6b   :  { %v99_v13 = vpop.permute.xlu2 %98 }
  0x6c   :  { %v112_v17 = vmul.f32 %v263_v12, %v99_v13 }
  0x6e   :  { %v116_v23 = vadd.f32 1.0, %v112_v17 }
  0x70   :  { %v149_v30 = vsel %vm120_vm1, %v116_v23, -inf }
  0x71   :  { %v150_v40 = vmax.f32 %v148_v29, %v149_v30  ;;  %v278_v30 = vld [vmem:[%s450_s5] ss:$0 sm:$0xff] }
  0x73   :  { %v151_v49 = vrot.slane %v150_v40, 4 }
  0x75   :  { %v152_v58 = vmax.f32 %v150_v40, %v151_v49 }
  0x77   :  { %v153_v3 = vrot.slane %v152_v58, 2 }
  0x79   :  { %v154_v10 = vmax.f32 %v152_v58, %v153_v3 }
  0x7a   :  { %v76_v18 = vpop.permute.xlu1 %75 }
  0x7b   :  { %v66_v19 = vpop.permute.xlu0 %65  ;;  %v85_v25 = vmul.f32 %v266_v20, %v76_v18  ;;  %v155_v18 = vrot.slane %v154_v10, 1 }
  0x7c   :  { %v83_v26 = vmul.f32 %v262_v14, %v66_v19 }
  0x7d   :  { %v89_v34 = vadd.f32 1.0, %v85_v25  ;;  %v156_v21 = vmax.f32 %v154_v10, %v155_v18 }
  0x7e   :  { %v87_v35 = vadd.f32 1.0, %v83_v26 }
  0x7f   :  { %v130_v44 = vsel %vm120_vm1, %v89_v34, -inf }
  0x80   :  { %v121_v45 = vsel %vm120_vm1, %v87_v35, -inf }
  0x82   :  { %v81_v32 = vpop.permute.xlu1 %80 }
  0x83   :  { %v71_v33 = vpop.permute.xlu0 %70  ;;  %v86_v36 = vmul.f32 %v267_v27, %v81_v32 }
  0x84   :  { %v84_v37 = vmul.f32 %v263_v12, %v71_v33  ;;  %v119_v12 = vld [vmem:[#allocation2] sm:$0x3] }
  0x85   :  { %v90_v41 = vadd.f32 1.0, %v86_v36 }
  0x86   :  { %v88_v42 = vadd.f32 1.0, %v84_v37 }
  0x87   :  { %v131_v46 = vsel %vm120_vm1, %v90_v41, -inf }
  0x88   :  { %v122_v47 = vsel %vm120_vm1, %v88_v42, -inf  ;;  %v132_v50 = vmax.f32 %v130_v44, %v131_v46 }
  0x89   :  { %v123_v51 = vmax.f32 %v121_v45, %v122_v47 }
  0x8a   :  { %v133_v52 = vrot.slane %v132_v50, 4  ;;  %v109_v54 = vpop.permute.xlu1 %108 }
  0x8b   :  { %v124_v53 = vrot.slane %v123_v51, 4  ;;  %v104_v55 = vpop.permute.xlu0 %103  ;;  %v114_v56 = vmul.f32 %v267_v27, %v109_v54 }
  0x8c   :  { %v113_v57 = vmul.f32 %v266_v20, %v104_v55  ;;  %v134_v59 = vmax.f32 %v132_v50, %v133_v52 }
  0x8d   :  { %v125_v60 = vmax.f32 %v123_v51, %v124_v53  ;;  %v118_v61 = vadd.f32 1.0, %v114_v56 }
  0x8e   :  { %v117_v62 = vadd.f32 1.0, %v113_v57  ;;  %v135_v63 = vrot.slane %v134_v59, 2 }
  0x8f   :  { %v126_v0 = vrot.slane %v125_v60, 2  ;;  %v158_v1 = vsel %vm120_vm1, %v118_v61, -inf }
  0x90   :  { %v157_v2 = vsel %vm120_vm1, %v117_v62, -inf  ;;  %v136_v4 = vmax.f32 %v134_v59, %v135_v63 }
  0x91   :  { %v127_v5 = vmax.f32 %v125_v60, %v126_v0  ;;  %v159_v6 = vmax.f32 %v157_v2, %v158_v1 }
  0x92   :  { %v137_v7 = vrot.slane %v136_v4, 1 }
  0x93   :  { %v128_v8 = vrot.slane %v127_v5, 1  ;;  %v160_v9 = vrot.slane %v159_v6, 4 }
  0x94   :  { %v138_v11 = vmax.f32 %v136_v4, %v137_v7 }
  0x95   :  { %v129_v13 = vmax.f32 %v127_v5, %v128_v8  ;;  %v161_v14 = vmax.f32 %v159_v6, %v160_v9 }
  0x97   :  { %v142_v15 = vsel %vm141_vm2, %v138_v11, %v129_v13  ;;  %v162_v16 = vrot.slane %v161_v14, 2 }
  0x98   :  { %v144_v17 = vmax.f32 %v119_v12, %v142_v15 }
  0x99   :  { %v163_v19 = vmax.f32 %v161_v14, %v162_v16 }
  0x9a   :  { %146 = vst.msk [vmem:[#allocation2] sm:$0x3] %vm44_vm0, %v144_v17 }
  0x9b   :  { %v164_v20 = vrot.slane %v163_v19, 1 }
  0x9d   :  { %v165_v23 = vmax.f32 %v163_v19, %v164_v20 }
  0x9f   :  { %v168_v24 = vsel %vm141_vm2, %v165_v23, %v156_v21 }
  0xa0   :  { %v170_v25 = vmax.f32 %v147_v22, %v168_v24 }
  0xa1   :  { %v175_v26 = vld [vmem:[#allocation2] sm:$0x3] }
  0xa2   :  { %171 = vst.msk [vmem:[#allocation3] sm:$0x3] %vm44_vm0, %v170_v25  ;;  %v256_v27 = vadd.f32 -1.0, %v175_v26 }
  0xa4   :  { %259 = vmatmul.msk.f32.vlgmr.msra.gmra.mxu1 %vm120_vm1, %v256_v27 }
  0xa9   :  { %v177_v28 = vld [vmem:[#allocation3] sm:$0x3] }
  0xaa   :  { %v257_v29 = vadd.f32 -1.0, %v177_v28 }
  0xac   :  { %258 = vmatmul.msk.f32.vlgmr.msra.gmra.mxu0 %vm120_vm1, %v257_v29 }
 0x121   :  { %v230_v31 = vpop.f32.mrf.mxu1 }
 0x129   :  { %v207_v32 = vpop.f32.mrf.mxu0 }
 0x12a   :  { %v231_v33 = vadd.f32 %v230_v31, %v207_v32 }
 0x12c   :  { %v237_v34 = vadd.f32 %v278_v30, %v231_v33 }
 0x12e   :  { %238 = vst [vmem:[#allocation7] sm:$0x3] %v237_v34 }
 0x12f   :  { %249 = dma.vmem_to_hbm [thread:$0]  %s245_s9, 32, %s247_s12, [#allocation6]  }
 0x130   :  { %329 = dma.done.wait [#allocation6], 32  }
 0x131   :  { %330 = vsyncadd [#allocation6], 4294967264 }
 0x132   :  { %254 = vsyncpa [#allocation5], 1 }
 0x133   :  { %255 = vsyncpa [#allocation6], 1 }

</bundles_post_ra>
